<compile_context>
chip_gen: v7x
topology: tpu7x:2x2x1
jax: 0.10.0
libtpu: 0.0.40
codegen_flags: <defaults>
</compile_context>

<pallas_src>
import functools

import jax
import jax.numpy as jnp
from jax.experimental import pallas as pl
from jax.experimental.pallas import tpu as pltpu

LANES = 128
MAX_ROW_TILE = 4096  # 4096 x 128 x 4B = 2 MiB per f32 input block


def _round_up(x, m):
    return ((x + m - 1) // m) * m


def _sublane_multiple(dtype):
    # Packed-sublane minimum: f32 -> 8, bf16/f16 -> 16, int8/fp8 -> 32.
    return max(8, 32 // jnp.dtype(dtype).itemsize)


def _softplus(x):
    # numerically stable softplus(x) = max(x, 0) + log1p(exp(-|x|))
    return jnp.maximum(x, 0.0) + jnp.log1p(jnp.exp(-jnp.abs(x)))


def _wcp_sums_kernel(pred_ref, gt_ref, y_ref, pos_ref, neg_ref, *,
                     rows, row_tile, n_tiles, tiles_per_split,
                     needs_row_mask, has_phantom):
    c = pl.program_id(0)          # split/core axis  ("parallel")
    i = pl.program_id(1)          # reduction axis   ("arbitrary")
    tile = c * tiles_per_split + i

    @pl.when(i == 0)
    def _():
        y_ref[...] = jnp.zeros_like(y_ref)
        pos_ref[...] = jnp.zeros_like(pos_ref)
        neg_ref[...] = jnp.zeros_like(neg_ref)

    x = pred_ref[...].astype(jnp.float32)
    y = gt_ref[...].astype(jnp.float32)
    sp = _softplus(x)
    pos = y * (sp - x)            # gt * softplus(-pred)       (per-element, no cancellation of sums)
    neg = sp - y * sp             # (1 - gt) * softplus(pred)

    def accumulate(yv, pv, nv):
        # Keep (8, 128) vector accumulators; cross-sublane/lane collapse is
        # deferred to the wrapper epilogue (cheap, once per call).
        y_ref[...] += jnp.sum(yv.reshape(-1, 8, LANES), axis=0)
        pos_ref[...] += jnp.sum(pv.reshape(-1, 8, LANES), axis=0)
        neg_ref[...] += jnp.sum(nv.reshape(-1, 8, LANES), axis=0)

    if needs_row_mask or has_phantom:
        # Only the last real tile can be ragged -> mask path is emitted once
        # and executed only on that tile. Phantom tiles (possible only when the
        # 2-way split leaves an odd tile behind) contribute nothing.
        n_full = n_tiles - 1 if needs_row_mask else n_tiles

        @pl.when(tile < n_full)
        def _():
            accumulate(y, pos, neg)

        if needs_row_mask:
            @pl.when(tile == n_tiles - 1)
            def _():
                # Row-index comparison only (no global element index) -> no
                # int32 overflow for any realistic input size. where() selects,
                # so NaN/Inf garbage in the OOB rows cannot leak through.
                row_ids = jax.lax.broadcasted_iota(jnp.int32, (row_tile, LANES), 0)
                mask = (tile * row_tile + row_ids) < rows
                accumulate(jnp.where(mask, y, 0.0),
                           jnp.where(mask, pos, 0.0),
                           jnp.where(mask, neg, 0.0))
    else:
        accumulate(y, pos, neg)


def _partial_sums_jnp(x, y):
    """Partial sums (sum y, sum y*softplus(-x), sum (1-y)*softplus(x)) in plain JAX."""
    x = x.astype(jnp.float32)
    y = y.astype(jnp.float32)
    sp = _softplus(x)
    return jnp.sum(y), jnp.sum(y * (sp - x)), jnp.sum(sp - y * sp)


def wcp_loss(pred, gt):
    """Pallas implementation of MyWcploss.forward(pred, gt) -> scalar loss."""
    assert pred.shape == gt.shape
    n_valid = pred.size  # static Python int

    flat_pred = pred.reshape(-1)
    flat_gt = gt.reshape(-1)
    rows = n_valid // LANES
    tail = n_valid - rows * LANES

    s_y = jnp.float32(0.0)
    s_pos = jnp.float32(0.0)
    s_neg = jnp.float32(0.0)

    if rows > 0:
        if tail:
            main_pred = flat_pred[: rows * LANES]
            main_gt = flat_gt[: rows * LANES]
        else:
            main_pred, main_gt = flat_pred, flat_gt
        pred2d = main_pred.reshape(rows, LANES)
        gt2d = main_gt.reshape(rows, LANES)

        sub = max(_sublane_multiple(pred.dtype), _sublane_multiple(gt.dtype))

        # Balanced tiling: pick the tile count first (even when split across 2
        # cores), then the tile size, so both splits get near-equal work and
        # phantom tiles essentially never occur.
        min_tiles = pl.cdiv(rows, MAX_ROW_TILE)
        nsplit = 2 if min_tiles >= 2 else 1
        n_tiles_target = _round_up(min_tiles, nsplit)
        row_tile = _round_up(pl.cdiv(rows, n_tiles_target), sub)
        n_tiles = pl.cdiv(rows, row_tile)
        tiles_per_split = pl.cdiv(n_tiles, nsplit)
        has_phantom = nsplit * tiles_per_split > n_tiles      # safety net only
        needs_row_mask = (rows % row_tile) != 0

        def in_index_map(c, i):
            t = c * tiles_per_split + i
            if has_phantom:
                # Phantom tile re-reads the last real (in-bounds) tile; its
                # contribution is skipped inside the kernel.
                t = jnp.minimum(t, n_tiles - 1)
            return (t, 0)

        def out_index_map(c, i):
            return (c, 0)

        kernel = functools.partial(
            _wcp_sums_kernel,
            rows=rows, row_tile=row_tile, n_tiles=n_tiles,
            tiles_per_split=tiles_per_split,
            needs_row_mask=needs_row_mask, has_phantom=has_phantom)

        out_sds = jax.ShapeDtypeStruct((nsplit * 8, LANES), jnp.float32)
        part_y, part_pos, part_neg = pl.pallas_call(
            kernel,
            out_shape=(out_sds, out_sds, out_sds),
            grid_spec=pltpu.PrefetchScalarGridSpec(
                num_scalar_prefetch=0,
                grid=(nsplit, tiles_per_split),
                in_specs=[
                    pl.BlockSpec((row_tile, LANES), in_index_map),
                    pl.BlockSpec((row_tile, LANES), in_index_map),
                ],
                out_specs=(
                    pl.BlockSpec((8, LANES), out_index_map),
                    pl.BlockSpec((8, LANES), out_index_map),
                    pl.BlockSpec((8, LANES), out_index_map),
                ),
            ),
            compiler_params=pltpu.CompilerParams(
                dimension_semantics=("parallel", "arbitrary")),
        )(pred2d, gt2d)

        s_y = jnp.sum(part_y)
        s_pos = jnp.sum(part_pos)
        s_neg = jnp.sum(part_neg)

    if tail:
        # <=127 leftover elements: negligible, handled in plain JAX.
        t_y, t_pos, t_neg = _partial_sums_jnp(flat_pred[rows * LANES:],
                                              flat_gt[rows * LANES:])
        s_y = s_y + t_y
        s_pos = s_pos + t_pos
        s_neg = s_neg + t_neg

    n = jnp.float32(n_valid)
    eps = jnp.float32(1e-10)
    count_pos = s_y + eps
    count_neg = n - s_y
    beta = count_neg / count_pos
    beta_back = count_pos / (count_pos + count_neg)
    return beta_back * (beta * s_pos + s_neg) / n


def wcp_loss_ref(pred, gt):
    """Pure-JAX reference mirroring the PyTorch module."""
    pred = pred.astype(jnp.float32)
    gt = gt.astype(jnp.float32)
    eps = 1e-10
    count_pos = jnp.sum(gt) + eps
    count_neg = jnp.sum(1.0 - gt)
    beta = count_neg / count_pos
    beta_back = count_pos / (count_pos + count_neg)
    sp_x = _softplus(pred)
    per_elem = beta * gt * (sp_x - pred) + (1.0 - gt) * sp_x
    return beta_back * jnp.mean(per_elem)


if __name__ == "__main__":
    key = jax.random.PRNGKey(0)
    k1, k2, k3, k4, k5, k6 = jax.random.split(key, 6)
    wcp = jax.jit(wcp_loss)

    # Lane-aligned NCHW inputs (2048 elements -> 16 full 128-lane rows).
    pred = jax.random.normal(k1, (2, 4, 16, 16), dtype=jnp.float32)
    gt = (jax.random.uniform(k2, (2, 4, 16, 16)) > 0.5).astype(jnp.float32)
    loss = jax.block_until_ready(wcp(pred, gt))
    ref = jax.block_until_ready(wcp_loss_ref(pred, gt))
    assert jnp.isfinite(loss), "loss is not finite"
    assert jnp.allclose(loss, ref, rtol=1e-4, atol=1e-5), (loss, ref)

    # Ragged shape: exercises the pl.when-gated row mask + wrapper lane-tail path.
    pred_r = jax.random.normal(k3, (2, 3, 17, 13), dtype=jnp.float32)
    gt_r = (jax.random.uniform(k4, (2, 3, 17, 13)) > 0.5).astype(jnp.float32)
    loss_r = jax.block_until_ready(wcp(pred_r, gt_r))
    ref_r = jax.block_until_ready(wcp_loss_ref(pred_r, gt_r))
    assert jnp.isfinite(loss_r), "ragged loss is not finite"
    assert jnp.allclose(loss_r, ref_r, rtol=1e-4, atol=1e-5), (loss_r, ref_r)

    # bf16 predictions: exercises the packed-dtype (16-row) tile rounding.
    pred_b = jax.random.normal(k5, (2, 4, 16, 16), dtype=jnp.bfloat16)
    gt_b = (jax.random.uniform(k6, (2, 4, 16, 16)) > 0.5).astype(jnp.float32)
    loss_b = jax.block_until_ready(wcp(pred_b, gt_b))
    ref_b = jax.block_until_ready(wcp_loss_ref(pred_b, gt_b))
    assert jnp.isfinite(loss_b), "bf16 loss is not finite"
    assert jnp.allclose(loss_b, ref_b, rtol=1e-3, atol=1e-5), (loss_b, ref_b)

    print("KERNEL_OK")
</pallas_src>

<mosaic_0001>
module attributes {stable_mosaic.version = 11 : i64} {
  func.func @_wcp_sums_kernel(%arg0: i32, %arg1: i32, %arg2: memref<16x128xf32, #tpu.memory_space<vmem>>, %arg3: memref<16x128xf32, #tpu.memory_space<vmem>>, %arg4: memref<8x128xf32, #tpu.memory_space<vmem>>, %arg5: memref<8x128xf32, #tpu.memory_space<vmem>>, %arg6: memref<8x128xf32, #tpu.memory_space<vmem>>) attributes {dimension_semantics = [#tpu.dimension_semantics<parallel>, #tpu.dimension_semantics<arbitrary>], iteration_bounds = array<i64: 1, 1>, scalar_prefetch = 0 : i64, scratch_operands = 0 : i64, tpu.core_type = #tpu.core_type<tc>, window_params = [{transform_indices = @transform_0, window_bounds = array<i64: 16, 128>}, {transform_indices = @transform_1, window_bounds = array<i64: 16, 128>}, {transform_indices = @transform_2, window_bounds = array<i64: 8, 128>}, {transform_indices = @transform_3, window_bounds = array<i64: 8, 128>}, {transform_indices = @transform_4, window_bounds = array<i64: 8, 128>}]} {
    %c0_i32 = arith.constant 0 : i32
    %0 = arith.cmpi eq, %arg1, %c0_i32 : i32
    %1 = arith.extui %0 : i1 to i32
    %c0_i32_0 = arith.constant 0 : i32
    %2 = arith.cmpi ne, %1, %c0_i32_0 : i32
    scf.if %2 {
      %cst_20 = arith.constant 0.000000e+00 : f32
      %32 = vector.broadcast %cst_20 : f32 to vector<8x128xf32>
      %c0_21 = arith.constant 0 : index
      %c0_22 = arith.constant 0 : index
      %33 = vector.load %arg4[%c0_21, %c0_22] : memref<8x128xf32, #tpu.memory_space<vmem>>, vector<8x128xf32>
      tpu.vector_store %arg4[%c0_21, %c0_22], %32 {strides = array<i32>} : memref<8x128xf32, #tpu.memory_space<vmem>>, vector<8x128xf32>,
      %cst_23 = arith.constant 0.000000e+00 : f32
      %34 = vector.broadcast %cst_23 : f32 to vector<8x128xf32>
      %c0_24 = arith.constant 0 : index
      %c0_25 = arith.constant 0 : index
      %35 = vector.load %arg5[%c0_24, %c0_25] : memref<8x128xf32, #tpu.memory_space<vmem>>, vector<8x128xf32>
      tpu.vector_store %arg5[%c0_24, %c0_25], %34 {strides = array<i32>} : memref<8x128xf32, #tpu.memory_space<vmem>>, vector<8x128xf32>,
      %cst_26 = arith.constant 0.000000e+00 : f32
      %36 = vector.broadcast %cst_26 : f32 to vector<8x128xf32>
      %c0_27 = arith.constant 0 : index
      %c0_28 = arith.constant 0 : index
      %37 = vector.load %arg6[%c0_27, %c0_28] : memref<8x128xf32, #tpu.memory_space<vmem>>, vector<8x128xf32>
      tpu.vector_store %arg6[%c0_27, %c0_28], %36 {strides = array<i32>} : memref<8x128xf32, #tpu.memory_space<vmem>>, vector<8x128xf32>,
    } else {
    }
    %c0 = arith.constant 0 : index
    %c0_1 = arith.constant 0 : index
    %3 = vector.load %arg2[%c0, %c0_1] : memref<16x128xf32, #tpu.memory_space<vmem>>, vector<16x128xf32>
    %c0_2 = arith.constant 0 : index
    %c0_3 = arith.constant 0 : index
    %4 = vector.load %arg3[%c0_2, %c0_3] : memref<16x128xf32, #tpu.memory_space<vmem>>, vector<16x128xf32>
    %cst = arith.constant 0.000000e+00 : f32
    %5 = vector.broadcast %cst : f32 to vector<16x128xf32>
    %6 = arith.maximumf %3, %5 : vector<16x128xf32>
    %7 = math.absf %3 : vector<16x128xf32>
    %cst_4 = arith.constant 0.000000e+00 : f32
    %8 = vector.broadcast %cst_4 : f32 to vector<16x128xf32>
    %9 = arith.subf %8, %7 : vector<16x128xf32>
    %10 = math.exp %9 : vector<16x128xf32>
    %11 = math.log1p %10 : vector<16x128xf32>
    %12 = arith.addf %6, %11 : vector<16x128xf32>
    %13 = arith.subf %12, %3 : vector<16x128xf32>
    %14 = arith.mulf %4, %13 : vector<16x128xf32>
    %15 = arith.mulf %4, %12 : vector<16x128xf32>
    %16 = arith.subf %12, %15 : vector<16x128xf32>
    %c0_5 = arith.constant 0 : index
    %c0_6 = arith.constant 0 : index
    %17 = vector.load %arg4[%c0_5, %c0_6] : memref<8x128xf32, #tpu.memory_space<vmem>>, vector<8x128xf32>
    %18 = vector.shape_cast %4 : vector<16x128xf32> to vector<2x8x128xf32>
    %cst_7 = arith.constant dense<0.000000e+00> : vector<8x128xf32>
    %19 = vector.multi_reduction <add>, %18, %cst_7 [0] : vector<2x8x128xf32> to vector<8x128xf32>
    %20 = arith.addf %17, %19 : vector<8x128xf32>
    %c0_8 = arith.constant 0 : index
    %c0_9 = arith.constant 0 : index
    %21 = vector.load %arg4[%c0_8, %c0_9] : memref<8x128xf32, #tpu.memory_space<vmem>>, vector<8x128xf32>
    tpu.vector_store %arg4[%c0_8, %c0_9], %20 {strides = array<i32>} : memref<8x128xf32, #tpu.memory_space<vmem>>, vector<8x128xf32>,
    %c0_10 = arith.constant 0 : index
    %c0_11 = arith.constant 0 : index
    %22 = vector.load %arg5[%c0_10, %c0_11] : memref<8x128xf32, #tpu.memory_space<vmem>>, vector<8x128xf32>
    %23 = vector.shape_cast %14 : vector<16x128xf32> to vector<2x8x128xf32>
    %cst_12 = arith.constant dense<0.000000e+00> : vector<8x128xf32>
    %24 = vector.multi_reduction <add>, %23, %cst_12 [0] : vector<2x8x128xf32> to vector<8x128xf32>
    %25 = arith.addf %22, %24 : vector<8x128xf32>
    %c0_13 = arith.constant 0 : index
    %c0_14 = arith.constant 0 : index
    %26 = vector.load %arg5[%c0_13, %c0_14] : memref<8x128xf32, #tpu.memory_space<vmem>>, vector<8x128xf32>
    tpu.vector_store %arg5[%c0_13, %c0_14], %25 {strides = array<i32>} : memref<8x128xf32, #tpu.memory_space<vmem>>, vector<8x128xf32>,
    %c0_15 = arith.constant 0 : index
    %c0_16 = arith.constant 0 : index
    %27 = vector.load %arg6[%c0_15, %c0_16] : memref<8x128xf32, #tpu.memory_space<vmem>>, vector<8x128xf32>
    %28 = vector.shape_cast %16 : vector<16x128xf32> to vector<2x8x128xf32>
    %cst_17 = arith.constant dense<0.000000e+00> : vector<8x128xf32>
    %29 = vector.multi_reduction <add>, %28, %cst_17 [0] : vector<2x8x128xf32> to vector<8x128xf32>
    %30 = arith.addf %27, %29 : vector<8x128xf32>
    %c0_18 = arith.constant 0 : index
    %c0_19 = arith.constant 0 : index
    %31 = vector.load %arg6[%c0_18, %c0_19] : memref<8x128xf32, #tpu.memory_space<vmem>>, vector<8x128xf32>
    tpu.vector_store %arg6[%c0_18, %c0_19], %30 {strides = array<i32>} : memref<8x128xf32, #tpu.memory_space<vmem>>, vector<8x128xf32>,
    return
  }
  func.func @transform_0(%arg0: i32, %arg1: i32) -> (i32, i32) {
    %c1_i32 = arith.constant 1 : i32
    %0 = arith.muli %arg0, %c1_i32 : i32
    %1 = arith.addi %0, %arg1 : i32
    %c0_i32 = arith.constant 0 : i32
    %c0_i32_0 = arith.constant 0 : i32
    return %1, %c0_i32 : i32, i32
  }
  func.func @transform_1(%arg0: i32, %arg1: i32) -> (i32, i32) {
    %c1_i32 = arith.constant 1 : i32
    %0 = arith.muli %arg0, %c1_i32 : i32
    %1 = arith.addi %0, %arg1 : i32
    %c0_i32 = arith.constant 0 : i32
    %c0_i32_0 = arith.constant 0 : i32
    return %1, %c0_i32 : i32, i32
  }
  func.func @transform_2(%arg0: i32, %arg1: i32) -> (i32, i32) {
    %c0_i32 = arith.constant 0 : i32
    %c0_i32_0 = arith.constant 0 : i32
    return %arg0, %c0_i32 : i32, i32
  }
  func.func @transform_3(%arg0: i32, %arg1: i32) -> (i32, i32) {
    %c0_i32 = arith.constant 0 : i32
    %c0_i32_0 = arith.constant 0 : i32
    return %arg0, %c0_i32 : i32, i32
  }
  func.func @transform_4(%arg0: i32, %arg1: i32) -> (i32, i32) {
    %c0_i32 = arith.constant 0 : i32
    %c0_i32_0 = arith.constant 0 : i32
    return %arg0, %c0_i32 : i32, i32
  }
}

</mosaic_0001>

<bundles_post_ra>
// kernel: wcp_loss.1
= control target key start
LH: loop header
LB: loop body
LE: loop exit
PB: predicated region body
PF: predicated region fallthrough
CT: control target
= control target key end

     0   :  { %s198_s1 = inlined_call_operand.vmem [shape: f32[16,128], index: 1, kind: input, shape index: {}]   ;;  %s199_s0 = inlined_call_operand.vmem [shape: f32[16,128], index: 0, kind: input, shape index: {}]   ;;  %s200_s2 = inlined_call_operand.vmem [shape: f32[8,128], index: 2, kind: output, shape index: {0}]   ;;  %s201_s3 = inlined_call_operand.vmem [shape: f32[8,128], index: 3, kind: output, shape index: {1}]   ;;  %s202_s4 = inlined_call_operand.vmem [shape: f32[8,128], index: 4, kind: output, shape index: {2}]  }
   0x1   :  { %v67_v0 = vld [vmem:[%s198_s1] sm:$0xff]  ;;  %v68_v1 = vld [vmem:[%s198_s1 + $0x8] sm:$0xff] }
   0x2   :  { %v65_v2 = vld [vmem:[%s199_s0] sm:$0xff]  ;;  %v108_v3 = vadd.f32 %v68_v1, %v67_v0  ;;  %v66_v4 = vld [vmem:[%s199_s0 + $0x8] sm:$0xff] }
   0x3   :  { %v71_v5 = vand.u32 2147483647, %v65_v2  ;;  %v72_v6 = vand.u32 2147483647, %v66_v4  ;;  %v69_v23 = vmax.f32 %v65_v2, 0.0  ;;  %v70_v26 = vmax.f32 %v66_v4, 0.0 }
   0x4   :  { %110 = vst [vmem:[%s200_s2] sm:$0xff] %v108_v3 }
   0x5   :  { %v73_v7 = vsub.f32 0.0, %v71_v5  ;;  %v74_v8 = vsub.f32 0.0, %v72_v6 }
   0x7   :  { %v75_v9 = vmul.f32 1.442695, %v73_v7  ;;  %v77_v10 = vmul.f32 1.442695, %v74_v8 }
   0x9   :  { %144 = vpow2.f32 %v75_v9 }
   0xa   :  { %146 = vpow2.f32 %v77_v10 }
  0x13   :  { %v145_v11 = vpop.eup %144 }
  0x14   :  { %v147_v12 = vpop.eup %146  ;;  %v79_v13 = vadd.f32 1.0, %v145_v11  ;;  %v82_v15 = vmul.f32 -0.5, %v145_v11  ;;  %v85_v18 = vand.u32 2147483647, %v145_v11 }
  0x15   :  { %v88_v14 = vadd.f32 1.0, %v147_v12  ;;  %v91_v16 = vmul.f32 -0.5, %v147_v12  ;;  %v94_v20 = vand.u32 2147483647, %v147_v12 }
  0x16   :  { %148 = vlog2.f32 %v79_v13  ;;  %v83_v17 = vadd.f32 1.0, %v82_v15  ;;  %vm86_vm0 = vcmp.lt.f32.partialorder %v85_v18, 0.0004427343 }
  0x17   :  { %150 = vlog2.f32 %v88_v14  ;;  %v92_v19 = vadd.f32 1.0, %v91_v16  ;;  %vm95_vm1 = vcmp.lt.f32.partialorder %v94_v20, 0.0004427343 }
  0x18   :  { %v84_v21 = vmul.f32 %v145_v11, %v83_v17 }
  0x19   :  { %v93_v24 = vmul.f32 %v147_v12, %v92_v19 }
  0x20   :  { %v149_v22 = vpop.eup %148 }
  0x21   :  { %v151_v25 = vpop.eup %150  ;;  %v81_v27 = vmul.f32 0.6931472, %v149_v22 }
  0x22   :  { %v90_v28 = vmul.f32 0.6931472, %v151_v25 }
  0x23   :  { %v87_v29 = vsel %vm86_vm0, %v84_v21, %v81_v27 }
  0x24   :  { %v96_v30 = vsel %vm95_vm1, %v93_v24, %v90_v28  ;;  %v97_v31 = vadd.f32 %v87_v29, %v69_v23 }
  0x25   :  { %v98_v32 = vadd.f32 %v96_v30, %v70_v26 }
  0x26   :  { %v99_v33 = vsub.f32 %v97_v31, %v65_v2  ;;  %v103_v34 = vmul.f32 %v97_v31, %v67_v0 }
  0x27   :  { %v100_v35 = vsub.f32 %v98_v32, %v66_v4  ;;  %v104_v36 = vmul.f32 %v98_v32, %v68_v1 }
  0x28   :  { %v101_v37 = vmul.f32 %v99_v33, %v67_v0  ;;  %v105_v38 = vsub.f32 %v97_v31, %v103_v34 }
  0x29   :  { %v102_v39 = vmul.f32 %v100_v35, %v68_v1  ;;  %v106_v40 = vsub.f32 %v98_v32, %v104_v36 }
  0x2b   :  { %v112_v41 = vadd.f32 %v102_v39, %v101_v37  ;;  %v116_v42 = vadd.f32 %v106_v40, %v105_v38 }
  0x2d   :  { %114 = vst [vmem:[%s201_s3] sm:$0xff] %v112_v41  ;;  %118 = vst [vmem:[%s202_s4] sm:$0xff] %v116_v42 }

</bundles_post_ra>
